<compile_context>
chip_gen: v6e
topology: v6e:2x2x1
jax: 0.10.0
libtpu: 0.0.40
codegen_flags: <defaults>
</compile_context>

<pallas_src>
import jax
import jax.numpy as jnp
from jax.experimental import pallas as pl
from jax.experimental.pallas import tpu as pltpu

_SUBLANE = 8


def _round_up(n, m):
    return ((n + m - 1) // m) * m


def _mlp_kernel(x_ref, w1_ref, b1_ref, w2_ref, b2_ref, w3_ref, b3_ref, o_ref):
    # One batch tile (TM rows); all three matmuls + ReLUs fused in VMEM.
    x = x_ref[...].astype(jnp.bfloat16)                         # cast in VMEM

    h1 = jnp.dot(x, w1_ref[...], preferred_element_type=jnp.float32) + b1_ref[...]
    h1 = jnp.maximum(h1, 0.0)                                   # ReLU (VPU, f32)

    # dropout(p=0.2): identity in inference mode.

    h2 = jnp.dot(h1.astype(jnp.bfloat16), w2_ref[...],
                 preferred_element_type=jnp.float32) + b2_ref[...]
    h2 = jnp.maximum(h2, 0.0)                                   # ReLU (VPU, f32)

    out = jnp.dot(h2.astype(jnp.bfloat16), w3_ref[...],
                  preferred_element_type=jnp.float32) + b3_ref[...]
    o_ref[...] = out.astype(o_ref.dtype)                        # f32 store


def init_params(key, input_size, output_size):
    """f32 params mirroring nn.Linear's U(-1/sqrt(fan_in), 1/sqrt(fan_in)).
    Weights stored as (in, out) = transpose of PyTorch's (out, in)."""
    def linear(k, fan_in, fan_out):
        kw, kb = jax.random.split(k)
        bound = 1.0 / jnp.sqrt(fan_in)
        w = jax.random.uniform(kw, (fan_in, fan_out), jnp.float32, -bound, bound)
        b = jax.random.uniform(kb, (1, fan_out), jnp.float32, -bound, bound)
        return w, b

    k1, k2, k3 = jax.random.split(key, 3)
    w1, b1 = linear(k1, input_size, 128)
    w2, b2 = linear(k2, 128, 64)
    w3, b3 = linear(k3, 64, output_size)
    return {"w1": w1, "b1": b1, "w2": w2, "b2": b2, "w3": w3, "b3": b3}


def prepare_params(params):
    """One-time prep: weights -> bf16 MXU operands, biases stay f32. No padding —
    full-extent blocks keep every spec legal and minimize HBM/VMEM footprint."""
    return {
        "w1": params["w1"].astype(jnp.bfloat16),
        "b1": params["b1"],
        "w2": params["w2"].astype(jnp.bfloat16),
        "b2": params["b2"],
        "w3": params["w3"].astype(jnp.bfloat16),
        "b3": params["b3"],
    }


def neural_net_forward(x, prepped, tm=1024):
    """x: (B, input_size) f32. prepped: output of prepare_params. Returns (B, out)."""
    B, in_size = x.shape
    h1 = prepped["w1"].shape[1]
    h2 = prepped["w2"].shape[1]
    out_size = prepped["w3"].shape[1]

    # Batch tile: big enough to amortize per-step overhead, sublane-aligned.
    tm = min(tm, _round_up(B, _SUBLANE))
    b_pad = _round_up(B, tm)
    x_p = x if b_pad == B else jnp.pad(x, ((0, b_pad - B), (0, 0)))

    grid = (b_pad // tm,)
    flops = 2 * b_pad * (in_size * h1 + h1 * h2 + h2 * out_size)
    bytes_accessed = (
        x_p.size * x_p.dtype.itemsize
        + sum(int(v.size) * v.dtype.itemsize for v in prepped.values())
        + b_pad * out_size * 4
    )

    out = pl.pallas_call(
        _mlp_kernel,
        out_shape=jax.ShapeDtypeStruct((b_pad, out_size), jnp.float32),
        grid=grid,
        in_specs=[
            pl.BlockSpec((tm, in_size), lambda i: (i, 0)),    # x tile, pipelined
            pl.BlockSpec((in_size, h1), lambda i: (0, 0)),    # w1 resident
            pl.BlockSpec((1, h1), lambda i: (0, 0)),          # b1 resident
            pl.BlockSpec((h1, h2), lambda i: (0, 0)),         # w2 resident
            pl.BlockSpec((1, h2), lambda i: (0, 0)),          # b2 resident
            pl.BlockSpec((h2, out_size), lambda i: (0, 0)),   # w3 resident
            pl.BlockSpec((1, out_size), lambda i: (0, 0)),    # b3 resident
        ],
        out_specs=pl.BlockSpec((tm, out_size), lambda i: (i, 0)),
        compiler_params=pltpu.CompilerParams(
            dimension_semantics=("parallel",),
            vmem_limit_bytes=32 * 1024 * 1024,
        ),
        cost_estimate=pl.CostEstimate(
            flops=flops, transcendentals=0, bytes_accessed=bytes_accessed),
    )(x_p, prepped["w1"], prepped["b1"], prepped["w2"], prepped["b2"],
      prepped["w3"], prepped["b3"])

    return out[:B, :]


def _reference_forward(x, p):
    """Pure-JAX reference mirroring the kernel's bf16 matmul operands / f32 accum."""
    bf = lambda a: a.astype(jnp.bfloat16).astype(jnp.float32)
    h1 = jnp.maximum(bf(x) @ bf(p["w1"]) + p["b1"], 0.0)
    h2 = jnp.maximum(bf(h1) @ bf(p["w2"]) + p["b2"], 0.0)
    return bf(h2) @ bf(p["w3"]) + p["b3"]


if __name__ == "__main__":
    # Small tabular shapes implied by the module: (B, input_size) -> (B, output_size)
    batch = 8
    input_size = 32
    output_size = 4

    key = jax.random.PRNGKey(0)
    kx, kp = jax.random.split(key)
    x = jax.random.normal(kx, (batch, input_size), dtype=jnp.float32)

    params = init_params(kp, input_size, output_size)
    prepped = prepare_params(params)

    out = neural_net_forward(x, prepped)
    out = jax.block_until_ready(out)

    ref = _reference_forward(x, params)
    assert out.shape == (batch, output_size)
    assert jnp.allclose(out, ref, atol=2e-3, rtol=2e-3), "mismatch vs JAX reference"

    print("KERNEL_OK")
</pallas_src>

<mosaic_0001>
module attributes {stable_mosaic.version = 11 : i64} {
  func.func @_mlp_kernel(%arg0: i32, %arg1: memref<8x32xf32, #tpu.memory_space<vmem>>, %arg2: memref<32x128xbf16, #tpu.memory_space<vmem>>, %arg3: memref<1x128xf32, #tpu.memory_space<vmem>>, %arg4: memref<128x64xbf16, #tpu.memory_space<vmem>>, %arg5: memref<1x64xf32, #tpu.memory_space<vmem>>, %arg6: memref<64x4xbf16, #tpu.memory_space<vmem>>, %arg7: memref<1x4xf32, #tpu.memory_space<vmem>>, %arg8: memref<8x4xf32, #tpu.memory_space<vmem>>) attributes {dimension_semantics = [#tpu.dimension_semantics<parallel>], iteration_bounds = array<i64: 1>, scalar_prefetch = 0 : i64, scratch_operands = 0 : i64, tpu.core_type = #tpu.core_type<tc>, window_params = [{transform_indices = @transform_0, window_bounds = array<i64: 8, 32>}, {pipeline_mode = #tpu.pipeline_mode<synchronous>, transform_indices = @transform_1, window_bounds = array<i64: 32, 128>}, {pipeline_mode = #tpu.pipeline_mode<synchronous>, transform_indices = @transform_2, window_bounds = array<i64: 1, 128>}, {pipeline_mode = #tpu.pipeline_mode<synchronous>, transform_indices = @transform_3, window_bounds = array<i64: 128, 64>}, {pipeline_mode = #tpu.pipeline_mode<synchronous>, transform_indices = @transform_4, window_bounds = array<i64: 1, 64>}, {pipeline_mode = #tpu.pipeline_mode<synchronous>, transform_indices = @transform_5, window_bounds = array<i64: 64, 4>}, {pipeline_mode = #tpu.pipeline_mode<synchronous>, transform_indices = @transform_6, window_bounds = array<i64: 1, 4>}, {transform_indices = @transform_7, window_bounds = array<i64: 8, 4>}]} {
    %c0 = arith.constant 0 : index
    %c0_0 = arith.constant 0 : index
    %0 = vector.load %arg1[%c0, %c0_0] : memref<8x32xf32, #tpu.memory_space<vmem>>, vector<8x32xf32>
    %1 = arith.truncf %0 : vector<8x32xf32> to vector<8x32xbf16>
    %c0_1 = arith.constant 0 : index
    %c0_2 = arith.constant 0 : index
    %2 = vector.load %arg2[%c0_1, %c0_2] : memref<32x128xbf16, #tpu.memory_space<vmem>>, vector<32x128xbf16>
    %cst = arith.constant dense<0.000000e+00> : vector<8x128xf32>
    %3 = tpu.matmul %1, %2, %cst {dimension_numbers = #tpu.dot_dimension_numbers<[1], [0], [0], [1], [0, 0, 1, 1], [], []>} : vector<8x32xbf16>, vector<32x128xbf16>, vector<8x128xf32> -> vector<8x128xf32>
    %c0_3 = arith.constant 0 : index
    %c0_4 = arith.constant 0 : index
    %4 = vector.load %arg3[%c0_3, %c0_4] : memref<1x128xf32, #tpu.memory_space<vmem>>, vector<1x128xf32>
    %5 = vector.broadcast %4 : vector<1x128xf32> to vector<8x128xf32>
    %6 = arith.addf %3, %5 : vector<8x128xf32>
    %cst_5 = arith.constant 0.000000e+00 : f32
    %7 = vector.broadcast %cst_5 : f32 to vector<8x128xf32>
    %8 = arith.maximumf %6, %7 : vector<8x128xf32>
    %9 = arith.truncf %8 : vector<8x128xf32> to vector<8x128xbf16>
    %c0_6 = arith.constant 0 : index
    %c0_7 = arith.constant 0 : index
    %10 = vector.load %arg4[%c0_6, %c0_7] : memref<128x64xbf16, #tpu.memory_space<vmem>>, vector<128x64xbf16>
    %cst_8 = arith.constant dense<0.000000e+00> : vector<8x64xf32>
    %11 = tpu.matmul %9, %10, %cst_8 {dimension_numbers = #tpu.dot_dimension_numbers<[1], [0], [0], [1], [0, 0, 1, 1], [], []>} : vector<8x128xbf16>, vector<128x64xbf16>, vector<8x64xf32> -> vector<8x64xf32>
    %c0_9 = arith.constant 0 : index
    %c0_10 = arith.constant 0 : index
    %12 = vector.load %arg5[%c0_9, %c0_10] : memref<1x64xf32, #tpu.memory_space<vmem>>, vector<1x64xf32>
    %13 = vector.broadcast %12 : vector<1x64xf32> to vector<8x64xf32>
    %14 = arith.addf %11, %13 : vector<8x64xf32>
    %cst_11 = arith.constant 0.000000e+00 : f32
    %15 = vector.broadcast %cst_11 : f32 to vector<8x64xf32>
    %16 = arith.maximumf %14, %15 : vector<8x64xf32>
    %17 = arith.truncf %16 : vector<8x64xf32> to vector<8x64xbf16>
    %c0_12 = arith.constant 0 : index
    %c0_13 = arith.constant 0 : index
    %18 = vector.load %arg6[%c0_12, %c0_13] : memref<64x4xbf16, #tpu.memory_space<vmem>>, vector<64x4xbf16>
    %cst_14 = arith.constant dense<0.000000e+00> : vector<8x4xf32>
    %19 = tpu.matmul %17, %18, %cst_14 {dimension_numbers = #tpu.dot_dimension_numbers<[1], [0], [0], [1], [0, 0, 1, 1], [], []>} : vector<8x64xbf16>, vector<64x4xbf16>, vector<8x4xf32> -> vector<8x4xf32>
    %c0_15 = arith.constant 0 : index
    %c0_16 = arith.constant 0 : index
    %20 = vector.load %arg7[%c0_15, %c0_16] : memref<1x4xf32, #tpu.memory_space<vmem>>, vector<1x4xf32>
    %21 = vector.broadcast %20 : vector<1x4xf32> to vector<8x4xf32>
    %22 = arith.addf %19, %21 : vector<8x4xf32>
    %c0_17 = arith.constant 0 : index
    %c0_18 = arith.constant 0 : index
    %23 = vector.load %arg8[%c0_17, %c0_18] : memref<8x4xf32, #tpu.memory_space<vmem>>, vector<8x4xf32>
    tpu.vector_store %arg8[%c0_17, %c0_18], %22 {strides = array<i32>} : memref<8x4xf32, #tpu.memory_space<vmem>>, vector<8x4xf32>,
    return
  }
  func.func @transform_0(%arg0: i32) -> (i32, i32) {
    %c0_i32 = arith.constant 0 : i32
    %c0_i32_0 = arith.constant 0 : i32
    return %arg0, %c0_i32 : i32, i32
  }
  func.func @transform_1(%arg0: i32) -> (i32, i32) {
    %c0_i32 = arith.constant 0 : i32
    %c0_i32_0 = arith.constant 0 : i32
    %c0_i32_1 = arith.constant 0 : i32
    return %c0_i32, %c0_i32_0 : i32, i32
  }
  func.func @transform_2(%arg0: i32) -> (i32, i32) {
    %c0_i32 = arith.constant 0 : i32
    %c0_i32_0 = arith.constant 0 : i32
    %c0_i32_1 = arith.constant 0 : i32
    return %c0_i32, %c0_i32_0 : i32, i32
  }
  func.func @transform_3(%arg0: i32) -> (i32, i32) {
    %c0_i32 = arith.constant 0 : i32
    %c0_i32_0 = arith.constant 0 : i32
    %c0_i32_1 = arith.constant 0 : i32
    return %c0_i32, %c0_i32_0 : i32, i32
  }
  func.func @transform_4(%arg0: i32) -> (i32, i32) {
    %c0_i32 = arith.constant 0 : i32
    %c0_i32_0 = arith.constant 0 : i32
    %c0_i32_1 = arith.constant 0 : i32
    return %c0_i32, %c0_i32_0 : i32, i32
  }
  func.func @transform_5(%arg0: i32) -> (i32, i32) {
    %c0_i32 = arith.constant 0 : i32
    %c0_i32_0 = arith.constant 0 : i32
    %c0_i32_1 = arith.constant 0 : i32
    return %c0_i32, %c0_i32_0 : i32, i32
  }
  func.func @transform_6(%arg0: i32) -> (i32, i32) {
    %c0_i32 = arith.constant 0 : i32
    %c0_i32_0 = arith.constant 0 : i32
    %c0_i32_1 = arith.constant 0 : i32
    return %c0_i32, %c0_i32_0 : i32, i32
  }
  func.func @transform_7(%arg0: i32) -> (i32, i32) {
    %c0_i32 = arith.constant 0 : i32
    %c0_i32_0 = arith.constant 0 : i32
    return %arg0, %c0_i32 : i32, i32
  }
}

</mosaic_0001>

<bundles_post_ra>
// kernel: tpu_custom_call.1
= control target key start
LH: loop header
LB: loop body
LE: loop exit
PB: predicated region body
PF: predicated region fallthrough
CT: control target
= control target key end

     0   :  { %v392_v0 = vmov 0.0   ;;  %vm393_vm0 = vmmov 0   ;;  %vm52_vm1 = vcmask 261120   ;;  %vm250_vm2 = vcmask 523264   ;;  %s494_s1 = inlined_call_operand.vmem [shape: bf16[32,128], index: 1, kind: input, shape index: {}]   ;;  %s495_s0 = inlined_call_operand.vmem [shape: f32[8,32], index: 0, kind: input, shape index: {}]   ;;  %s496_s3 = inlined_call_operand.vmem [shape: bf16[128,64], index: 3, kind: input, shape index: {}]   ;;  %s497_s5 = inlined_call_operand.vmem [shape: bf16[64,4], index: 5, kind: input, shape index: {}]   ;;  %s498_s2 = inlined_call_operand.vmem [shape: f32[1,128], index: 2, kind: input, shape index: {}]   ;;  %s499_s4 = inlined_call_operand.vmem [shape: f32[1,64], index: 4, kind: input, shape index: {}]   ;;  %s500_s6 = inlined_call_operand.vmem [shape: f32[1,4], index: 6, kind: input, shape index: {}]   ;;  %s501_s7 = inlined_call_operand.vmem [shape: f32[8,4], index: 7, kind: output, shape index: {}]  }
   0x1   :  { %336 = vmatprep.subr.bf16.mxu0 %v392_v0  ;;  %v378_v1 = vld [vmem:[%s494_s1 + $0x8] sm:$0xff]   ;;  %340 = vmatprep.mubr.msk.bf16.mxu0 %vm393_vm0, %v392_v0  ;;  %v379_v2 = vld [vmem:[%s494_s1] sm:$0xff]   ;;  %v380_v4 = vld [vmem:[%s496_s3 + $0x38] sm:$0xff]   ;;  %vm294_vm3 = vcmask 31744  }
   0x2   :  { %344 = vmatprep.subr.bf16.mxu1 %v392_v0  ;;  %360 = vmatprep.mubr.msk.bf16.mxu1 %vm393_vm0, %v392_v0  ;;  %v27_v3 = vld [vmem:[%s495_s0] sm:$0xff]  ;;  %v381_v6 = vld [vmem:[%s496_s3 + $0x30] sm:$0xff]   ;;  %v382_v7 = vld [vmem:[%s496_s3 + $0x28] sm:$0xff]  }
   0x3   :  { %337 = vmatpush3.bf16.msra.mxu0 %v378_v1  ;;  %v28_v5 = vpack.c.bf16 %v27_v3, %v27_v3  ;;  %345 = vmatpush3.bf16.msra.mxu1 %v380_v4  ;;  %v383_v8 = vld [vmem:[%s496_s3 + $0x20] sm:$0xff]   ;;  %v384_v9 = vld [vmem:[%s496_s3 + $0x18] sm:$0xff]   ;;  %v385_v10 = vld [vmem:[%s496_s3 + $0x10] sm:$0xff]  }
   0x4   :  { %338 = vmatprep.subr.bf16.mxu0 %v392_v0  ;;  %346 = vmatprep.subr.bf16.mxu1 %v392_v0  ;;  %v386_v11 = vld [vmem:[%s496_s3 + $0x8] sm:$0xff]   ;;  %v387_v12 = vld [vmem:[%s496_s3] sm:$0xff]   ;;  %v388_v13 = vld [vmem:[%s497_s5 + $0x18] sm:$0xff]  }
   0x5   :  { %v389_v14 = vld [vmem:[%s497_s5 + $0x10] sm:$0xff]   ;;  %v300_v15 = vld [vmem:[%s498_s2] ss:$0 sm:$0xff]  ;;  %v390_v23 = vld [vmem:[%s497_s5 + $0x8] sm:$0xff]  }
   0x6   :  { %v391_v24 = vld [vmem:[%s497_s5] sm:$0xff]  }
   0x7   :  { %339 = vmatpush3.bf16.msra.mxu0 %v379_v2  ;;  %347 = vmatpush3.bf16.msra.mxu1 %v381_v6  ;;  %v304_v25 = vld [vmem:[%s499_s4] ss:$0 sm:$0xff] }
   0x8   :  { %364 = vmatprep.subr.bf16.mxu0 %v392_v0  ;;  %348 = vmatprep.subr.bf16.mxu1 %v392_v0  ;;  %v313_v33 = vld [vmem:[%s500_s6] ss:$0 sm:$0xff] }
   0xa   :  { %341 = vmatmul.mubr.msk.bf16.vlgmr.msra.gmra.mxu0 %vm52_vm1, %v28_v5 }
   0xb   :  { %372 = vmatprep.mubr.msk.bf16.mxu0 %vm393_vm0, %v392_v0  ;;  %349 = vmatpush3.bf16.msra.mxu1 %v382_v7 }
   0xc   :  { %350 = vmatprep.subr.bf16.mxu1 %v392_v0  ;;  %365 = vmatpush3.bf16.msra.mxu0 %v388_v13 }
   0xd   :  { %366 = vmatprep.subr.bf16.mxu0 %v392_v0 }
   0xf   :  { %351 = vmatpush3.bf16.msra.mxu1 %v383_v8 }
  0x10   :  { %352 = vmatprep.subr.bf16.mxu1 %v392_v0  ;;  %367 = vmatpush3.bf16.msra.mxu0 %v389_v14 }
  0x11   :  { %368 = vmatprep.subr.bf16.mxu0 %v392_v0 }
  0x13   :  { %353 = vmatpush3.bf16.msra.mxu1 %v384_v9 }
  0x14   :  { %354 = vmatprep.subr.bf16.mxu1 %v392_v0  ;;  %369 = vmatpush3.bf16.msra.mxu0 %v390_v23 }
  0x15   :  { %370 = vmatprep.subr.bf16.mxu0 %v392_v0 }
  0x17   :  { %355 = vmatpush3.bf16.msra.mxu1 %v385_v10 }
  0x18   :  { %356 = vmatprep.subr.bf16.mxu1 %v392_v0  ;;  %371 = vmatpush3.bf16.msra.mxu0 %v391_v24 }
  0x1b   :  { %357 = vmatpush3.bf16.msra.mxu1 %v386_v11 }
  0x1c   :  { %358 = vmatprep.subr.bf16.mxu1 %v392_v0 }
  0x1f   :  { %359 = vmatpush3.bf16.msra.mxu1 %v387_v12 }
  0xca   :  { %v90_v16 = vpop.f32.mrf.mxu0 }
  0xcb   :  { %v91_v17 = vadd.f32 %v300_v15, %v90_v16 }
  0xcc   :  { %v342_v18 = vpop.f32.mrf.mxu0 }
  0xcd   :  { %v96_v19 = vmax.f32 %v91_v17, 0.0 }
  0xce   :  { %v93_v20 = vpop.f32.mrf.mxu0 }
  0xcf   :  { %v97_v21 = vpack.c.bf16 %v96_v19, %v96_v19 }
  0xd0   :  { %v343_v22 = vpop.f32.mrf.mxu0 }
  0xd1   :  { %361 = vmatmul.mubr.bf16.vlgmr.msra.gmra.mxu1 %v97_v21 }
 0x191   :  { %v203_v26 = vpop.f32.mrf.mxu1 }
 0x192   :  { %v204_v27 = vadd.f32 %v304_v25, %v203_v26 }
 0x193   :  { %v362_v28 = vpop.f32.mrf.mxu1 }
 0x194   :  { %v209_v29 = vmax.f32 %v204_v27, 0.0 }
 0x195   :  { %v206_v30 = vpop.f32.mrf.mxu1 }
 0x196   :  { %v210_v31 = vpack.c.bf16 %v209_v29, %v209_v29 }
 0x197   :  { %v363_v32 = vpop.f32.mrf.mxu1 }
 0x198   :  { %373 = vmatmul.mubr.msk.bf16.vlgmr.msra.gmra.mxu0 %vm250_vm2, %v210_v31 }
 0x258   :  { %v288_v34 = vpop.f32.mrf.mxu0 }
 0x259   :  { %v289_v35 = vadd.f32 %v313_v33, %v288_v34 }
 0x25a   :  { %v374_v36 = vpop.f32.mrf.mxu0 }
 0x25b   :  { %295 = vst.msk [vmem:[%s501_s7] sm:$0xff] %vm294_vm3, %v289_v35 }
 0x25c   :  { %v291_v37 = vpop.f32.mrf.mxu0 }
 0x25e   :  { %v375_v38 = vpop.f32.mrf.mxu0 }

</bundles_post_ra>
